<compile_context>
chip_gen: v6e
topology: v6e:2x2x1
jax: 0.10.0
libtpu: 0.0.40
codegen_flags: <defaults>
</compile_context>

<pallas_src>
import jax
import jax.numpy as jnp
from jax import lax
from jax.experimental import pallas as pl
from jax.experimental.pallas import tpu as pltpu


def bigram_lm_kernel(idx_ref, fused_ref, w2_ref, b2_ref, out_ref):
    """One batch tile: (tile_b,) token ids -> (tile_b, V) log-probs."""
    tile_b = idx_ref.shape[0]
    V = fused_ref.shape[0]

    # --- embedding + linear1 (+ bias), fused: one-hot row-select of the
    #     precomputed (V, H) table via a single K=128 MXU matmul.
    idx = idx_ref[...]                                          # (tile_b, 1) int32
    lane_ids = lax.broadcasted_iota(jnp.int32, (tile_b, V), 1)  # (tile_b, V)
    onehot = (lane_ids == idx).astype(jnp.float32)              # (tile_b, V)
    h = jnp.dot(onehot, fused_ref[...],
                preferred_element_type=jnp.float32)             # (tile_b, H)
    h = jnp.maximum(h, 0.0)                                     # relu

    # --- linear2
    logits = jnp.dot(h, w2_ref[...],
                     preferred_element_type=jnp.float32) + b2_ref[...]  # (tile_b, V)

    # --- log_softmax over the vocab (lane) axis, f32 throughout
    m = jnp.max(logits, axis=-1, keepdims=True)
    shifted = logits - m
    lse = jnp.log(jnp.sum(jnp.exp(shifted), axis=-1, keepdims=True))
    out_ref[...] = shifted - lse


def bigram_lm_forward(idx, emb_table, w1, b1, w2, b2, *, tile_b=256):
    """idx: (B,) int token ids.  Returns (B, vocab_size) float32 log-probs."""
    B = idx.shape[0]
    V, D = emb_table.shape
    H = w1.shape[1]

    # Fused embedding+linear1 table, built once per call (tiny (V,D)@(D,H) in
    # XLA).  Since one-hot selection is exact, folding b1 here is also exact.
    fused = (jnp.dot(emb_table.astype(jnp.float32), w1.astype(jnp.float32),
                     preferred_element_type=jnp.float32)
             + b1.astype(jnp.float32).reshape(1, H))            # (V, H)

    # Batch tiling: tile_b rows per grid step (multiple of 8 sublanes);
    # pad B up to a multiple of tile_b with token 0 and slice afterwards.
    padded_min = max(8, int(pl.cdiv(B, 8)) * 8)
    tile_b = min(tile_b, padded_min)
    Bp = int(pl.cdiv(B, tile_b)) * tile_b
    idx_p = jnp.zeros((Bp, 1), jnp.int32).at[:B, 0].set(idx.astype(jnp.int32))

    grid = (Bp // tile_b,)
    out = pl.pallas_call(
        bigram_lm_kernel,
        out_shape=jax.ShapeDtypeStruct((Bp, V), jnp.float32),
        grid_spec=pltpu.PrefetchScalarGridSpec(
            num_scalar_prefetch=0,
            grid=grid,
            in_specs=[
                pl.BlockSpec((tile_b, 1), lambda i: (i, 0)),    # idx tile
                pl.BlockSpec((V, H), lambda i: (0, 0)),         # fused emb@W1+b1
                pl.BlockSpec((H, V), lambda i: (0, 0)),         # W2
                pl.BlockSpec((1, V), lambda i: (0, 0)),         # b2
            ],
            # lane-dense output tile: full V (=128) on the last axis
            out_specs=pl.BlockSpec((tile_b, V), lambda i: (i, 0)),
        ),
        compiler_params=pltpu.CompilerParams(
            dimension_semantics=("parallel",)),
    )(idx_p, fused, w2.astype(jnp.float32), b2.astype(jnp.float32).reshape(1, V))

    return out[:B]


def reference_forward(idx, emb_table, w1, b1, w2, b2):
    embeds = emb_table[idx]                       # (B, D)
    h = jnp.maximum(embeds @ w1 + b1, 0.0)        # (B, H)
    logits = h @ w2 + b2                          # (B, V)
    return jax.nn.log_softmax(logits, axis=1)


if __name__ == "__main__":
    vocab_size = 128
    embedding_dim = 32
    hidden = 128          # fixed to 128 by the module definition

    key = jax.random.PRNGKey(0)
    k_emb, k_w1, k_b1, k_w2, k_b2, k_idx = jax.random.split(key, 6)

    # deterministic synthetic parameters (shapes match nn.Embedding / nn.Linear)
    emb_table = jax.random.normal(k_emb, (vocab_size, embedding_dim), jnp.float32)
    w1 = jax.random.normal(k_w1, (embedding_dim, hidden), jnp.float32) * 0.1
    b1 = jax.random.normal(k_b1, (hidden,), jnp.float32) * 0.1
    w2 = jax.random.normal(k_w2, (hidden, vocab_size), jnp.float32) * 0.1
    b2 = jax.random.normal(k_b2, (vocab_size,), jnp.float32) * 0.1

    ok = True
    # Case 1: batch large enough to exercise the grid (2 tiles of 256 rows).
    # Case 2: tiny, unaligned batch to exercise the padding path.
    for batch in (512, 5):
        idx = jax.random.randint(k_idx, (batch,), 0, vocab_size, jnp.int32)
        log_probs = bigram_lm_forward(idx, emb_table, w1, b1, w2, b2)
        log_probs = jax.block_until_ready(log_probs)
        ref = reference_forward(idx, emb_table, w1, b1, w2, b2)
        ok &= log_probs.shape == (batch, vocab_size)
        ok &= bool(jnp.allclose(log_probs, ref, atol=1e-4, rtol=1e-4))

    assert ok
    print("KERNEL_OK")
</pallas_src>

<mosaic_0001>
module attributes {stable_mosaic.version = 11 : i64} {
  func.func @bigram_lm_kernel(%arg0: i32, %arg1: memref<256x1xi32, #tpu.memory_space<vmem>>, %arg2: memref<128x128xf32, #tpu.memory_space<vmem>>, %arg3: memref<128x128xf32, #tpu.memory_space<vmem>>, %arg4: memref<1x128xf32, #tpu.memory_space<vmem>>, %arg5: memref<256x128xf32, #tpu.memory_space<vmem>>) attributes {dimension_semantics = [#tpu.dimension_semantics<parallel>], iteration_bounds = array<i64: 2>, scalar_prefetch = 0 : i64, scratch_operands = 0 : i64, tpu.core_type = #tpu.core_type<tc>, window_params = [{transform_indices = @transform_0, window_bounds = array<i64: 256, 1>}, {pipeline_mode = #tpu.pipeline_mode<synchronous>, transform_indices = @transform_1, window_bounds = array<i64: 128, 128>}, {pipeline_mode = #tpu.pipeline_mode<synchronous>, transform_indices = @transform_2, window_bounds = array<i64: 128, 128>}, {pipeline_mode = #tpu.pipeline_mode<synchronous>, transform_indices = @transform_3, window_bounds = array<i64: 1, 128>}, {transform_indices = @transform_4, window_bounds = array<i64: 256, 128>}]} {
    %c0 = arith.constant 0 : index
    %c0_0 = arith.constant 0 : index
    %0 = vector.load %arg1[%c0, %c0_0] : memref<256x1xi32, #tpu.memory_space<vmem>>, vector<256x1xi32>
    %1 = tpu.iota {dimensions = array<i32: 1>} : vector<256x128xi32>
    %2 = vector.broadcast %0 : vector<256x1xi32> to vector<256x128xi32>
    %3 = arith.cmpi eq, %1, %2 : vector<256x128xi32>
    %4 = arith.extui %3 : vector<256x128xi1> to vector<256x128xi32>
    %5 = arith.sitofp %4 : vector<256x128xi32> to vector<256x128xf32>
    %c0_1 = arith.constant 0 : index
    %c0_2 = arith.constant 0 : index
    %6 = vector.load %arg2[%c0_1, %c0_2] : memref<128x128xf32, #tpu.memory_space<vmem>>, vector<128x128xf32>
    %cst = arith.constant dense<0.000000e+00> : vector<256x128xf32>
    %7 = tpu.matmul %5, %6, %cst {dimension_numbers = #tpu.dot_dimension_numbers<[1], [0], [0], [1], [0, 0, 1, 1], [], []>} : vector<256x128xf32>, vector<128x128xf32>, vector<256x128xf32> -> vector<256x128xf32>
    %cst_3 = arith.constant 0.000000e+00 : f32
    %8 = vector.broadcast %cst_3 : f32 to vector<256x128xf32>
    %9 = arith.maximumf %7, %8 : vector<256x128xf32>
    %c0_4 = arith.constant 0 : index
    %c0_5 = arith.constant 0 : index
    %10 = vector.load %arg3[%c0_4, %c0_5] : memref<128x128xf32, #tpu.memory_space<vmem>>, vector<128x128xf32>
    %cst_6 = arith.constant dense<0.000000e+00> : vector<256x128xf32>
    %11 = tpu.matmul %9, %10, %cst_6 {dimension_numbers = #tpu.dot_dimension_numbers<[1], [0], [0], [1], [0, 0, 1, 1], [], []>} : vector<256x128xf32>, vector<128x128xf32>, vector<256x128xf32> -> vector<256x128xf32>
    %c0_7 = arith.constant 0 : index
    %c0_8 = arith.constant 0 : index
    %12 = vector.load %arg4[%c0_7, %c0_8] : memref<1x128xf32, #tpu.memory_space<vmem>>, vector<1x128xf32>
    %13 = vector.broadcast %12 : vector<1x128xf32> to vector<256x128xf32>
    %14 = arith.addf %11, %13 : vector<256x128xf32>
    %cst_9 = arith.constant dense<0xFF800000> : vector<256xf32>
    %15 = vector.multi_reduction <maximumf>, %14, %cst_9 [1] : vector<256x128xf32> to vector<256xf32>
    %16 = vector.shape_cast %15 : vector<256xf32> to vector<256x1xf32>
    %17 = vector.broadcast %16 : vector<256x1xf32> to vector<256x128xf32>
    %18 = arith.subf %14, %17 : vector<256x128xf32>
    %19 = math.exp %18 : vector<256x128xf32>
    %cst_10 = arith.constant dense<0.000000e+00> : vector<256xf32>
    %20 = vector.multi_reduction <add>, %19, %cst_10 [1] : vector<256x128xf32> to vector<256xf32>
    %21 = vector.shape_cast %20 : vector<256xf32> to vector<256x1xf32>
    %22 = math.log %21 : vector<256x1xf32>
    %23 = vector.broadcast %22 : vector<256x1xf32> to vector<256x128xf32>
    %24 = arith.subf %18, %23 : vector<256x128xf32>
    %c0_11 = arith.constant 0 : index
    %c0_12 = arith.constant 0 : index
    %25 = vector.load %arg5[%c0_11, %c0_12] : memref<256x128xf32, #tpu.memory_space<vmem>>, vector<256x128xf32>
    tpu.vector_store %arg5[%c0_11, %c0_12], %24 {strides = array<i32>} : memref<256x128xf32, #tpu.memory_space<vmem>>, vector<256x128xf32>,
    return
  }
  func.func @transform_0(%arg0: i32) -> (i32, i32) {
    %c0_i32 = arith.constant 0 : i32
    %c0_i32_0 = arith.constant 0 : i32
    return %arg0, %c0_i32 : i32, i32
  }
  func.func @transform_1(%arg0: i32) -> (i32, i32) {
    %c0_i32 = arith.constant 0 : i32
    %c0_i32_0 = arith.constant 0 : i32
    %c0_i32_1 = arith.constant 0 : i32
    return %c0_i32, %c0_i32_0 : i32, i32
  }
  func.func @transform_2(%arg0: i32) -> (i32, i32) {
    %c0_i32 = arith.constant 0 : i32
    %c0_i32_0 = arith.constant 0 : i32
    %c0_i32_1 = arith.constant 0 : i32
    return %c0_i32, %c0_i32_0 : i32, i32
  }
  func.func @transform_3(%arg0: i32) -> (i32, i32) {
    %c0_i32 = arith.constant 0 : i32
    %c0_i32_0 = arith.constant 0 : i32
    %c0_i32_1 = arith.constant 0 : i32
    return %c0_i32, %c0_i32_0 : i32, i32
  }
  func.func @transform_4(%arg0: i32) -> (i32, i32) {
    %c0_i32 = arith.constant 0 : i32
    %c0_i32_0 = arith.constant 0 : i32
    return %arg0, %c0_i32 : i32, i32
  }
}

</mosaic_0001>

<bundles_post_ra>
// kernel: tpu_custom_call.1
= control target key start
LH: loop header
LB: loop body
LE: loop exit
PB: predicated region body
PF: predicated region fallthrough
CT: control target
= control target key end

     0   :  { %9 = vsyncpa [#allocation3], 0  ;;  %s2602_s0 = inlined_call_operand.vmem [shape: s32[512,1], index: 0, kind: input, shape index: {}]   ;;  %s2603_s1 = inlined_call_operand.vmem [shape: f32[128,128], index: 1, kind: input, shape index: {}]   ;;  %s2604_s2 = inlined_call_operand.vmem [shape: f32[128,128], index: 2, kind: input, shape index: {}]   ;;  %s2605_s3 = inlined_call_operand.vmem [shape: f32[1,128], index: 3, kind: input, shape index: {}]   ;;  %s2606_s4 = inlined_call_operand.hbm [shape: f32[512,128], index: 4, kind: output, shape index: {}]  }
   0x1   :  { %11 = vsyncpa [#allocation3 + $0x1], 0  ;;  %s1973_s15 = smov 0   ;;  %s1975_s16 = smov 0  }
   0x2   :  { %s1977_s17 = smov 0   ;;  %s1979_s18 = smov 0  }
   0x3 LB: > { %s1994_s19 = sadd.s32 4294967295, %s1941_s18   ;;  %s1374_s20 = sadd.s32 4294967294, %s1941_s18   ;;  %s1941_s18 = sphi %s1979_s18, %s2612_s18   ;;  %s1937_s17 = sphi %s1977_s17, %s2611_s17   ;;  %s1933_s16 = sphi %s1975_s16, %s2610_s16   ;;  %s1929_s15 = sphi %s1973_s15, %s2609_s15  }
   0x4   : > { %s1998_s21 = sadd.s32 1, %s1941_s18   ;;  %s113_s22 = sadd.s32 1, %s1937_s17 }
   0x5   : > { %s110_s23 = ssub.s32 %s1941_s18, %s1998_s21  ;;  %p123_p0 = scmp.ne.s32.totalorder %s1937_s17, %s1933_s16 }
   0x6   : > { %p111_p1 = scmp.eq.s32.totalorder %s110_s23, 0  ;;  %p124_p2 = scmp.eq.s32.totalorder %s1994_s19, 1 }
   0x7   : > { %p129_p3 = scmp.ne.s32.totalorder %s1933_s16, %s1929_s15  ;;  %p130_p4 = scmp.eq.s32.totalorder %s1374_s20, 1 }
   0x8   : > { %s2009_s24 = scalar_select %p111_p1, %s1937_s17, %s113_s22  }
   0x9   : > { %p2011_p5 = por %p124_p2, %p123_p0  ;;  %p2015_p6 = por %p130_p4, %p129_p3 }
   0xa   : > { %p1377_p7 = scmp.ge.s32.totalorder %s1941_s18, 1  ;;  %p166_p8 = scmp.lt.s32.totalorder %s1941_s18, 3 }
   0xc   : > { %p167_p9 = pnand %p1377_p7, %p166_p8 }
   0xd   : > { %s1379_s27 = sshll.u32 (!%p167_p9), %s1994_s19, 5  ;;  %s189_s5 = sand.u32 (!%p167_p9), 1, %s1933_s16  }
   0xe   : > { %170 = sbr.rel (%p167_p9) target bundleno = 941 (0x3ad), region = 36  ;;  %p193_p10 = scmp.lt.s32.totalorder (!%p167_p9), %s1379_s27, 63 }
   0xf   : > { %s1378_s6 = sshll.u32 (!%p167_p9), %s189_s5, 8  ;;  %s1945_s14 = smov (!%p167_p9), [#allocation2]  }
  0x10   : > { %s2486_s7 = scalar_lea.vmem (!%p167_p9), [#allocation2], %s1378_s6  ;;  %s1885_s20 = sshll.u32 (!%p167_p9), %s1945_s14, 4  ;;  %s1886_s20 = int_to_ptr.vmem [resolvable:$false] %s1885_s20 }
  0x11   : > { %s1312_s9 = sshll.u32 (!%p167_p9), %s2486_s7, 4  ;;  %s1887_s22 = scalar_lea.vmem (!%p167_p9), %s1886_s20, 8192  ;;  %s2555_s9 = int_to_ptr.vmem [resolvable:$true] %s1312_s9 }
  0x12   : > { %s1881_s13 = scalar_lea.vmem (!%p167_p9), %s2555_s9, 4096  ;;  %p1888_p0 = scmp.lt.s32.totalorder (!%p167_p9), %s2555_s9, %s1886_s20 }
  0x13   : > { %v440_v0 = vld [vmem:[%s2603_s1 + $0x78] sm:$0xff]  ;;  %v1943_v1 = vmov 0   ;;  %v439_v2 = vld [vmem:[%s2603_s1 + $0x70] sm:$0xff]  ;;  %s2614_s27 = smov (!%p193_p10, %s1379_s27), 63  ;;  %v438_v3 = vld [vmem:[%s2603_s1 + $0x68] sm:$0xff]  ;;  %v231_v62 = vlaneseq  ;;  %p1882_p11 = scmp.ne.s32.totalorder %s2555_s9, %s1881_s13 }
  0x14   : > { %1752 = vset.pattern.permute.xlu1 %v1943_v1  ;;  %1751 = vset.pattern.permute.xlu0 %v1943_v1  ;;  %s1380_s8 = sshll.u32 %s2614_s27, 3  ;;  %v437_v4 = vld [vmem:[%s2603_s1 + $0x60] sm:$0xff]  ;;  %v436_v7 = vld [vmem:[%s2603_s1 + $0x58] sm:$0xff]  ;;  %v435_v10 = vld [vmem:[%s2603_s1 + $0x50] sm:$0xff]  ;;  %p1889_p1 = scmp.lt.s32.totalorder %s1887_s22, %s1881_s13 }
  0x15   : > { %1548 = vmatprep.subr.mxu0 %v440_v0  ;;  %s2034_s11 = scalar_lea.vmem %s2602_s0, %s1380_s8  ;;  %v434_v13 = vld [vmem:[%s2603_s1 + $0x48] sm:$0xff]  ;;  %v433_v14 = vld [vmem:[%s2603_s1 + $0x40] sm:$0xff]  ;;  %v432_v17 = vld [vmem:[%s2603_s1 + $0x38] sm:$0xff]  ;;  %v2146_v63 = vand.u32 127, %v231_v62  ;;  %s1451_s8 = sshll.u32 %s1994_s19, 12 }
  0x16   : > { %1549 = vmatpush3.msra.mxu0 %v440_v0  ;;  %v201_v5 = vld [vmem:[%s2034_s11 + $0x10] sm:$0xff]  ;;  %v199_v6 = vld [vmem:[%s2034_s11] sm:$0xff]  ;;  %v202_v8 = vld [vmem:[%s2034_s11 + $0x18] sm:$0xff]  ;;  %s2562_s19 = scalar_lea.sflag [#allocation3], %s189_s5  ;;  %p1883_p12 = pnand %p1882_p11, %p2011_p5 }
  0x17   : > { %1550 = vmatprep.subr.mxu0 %v439_v2  ;;  %240 = vperm.xlu1 %1752, %v201_v5   ;;  %v200_v9 = vld [vmem:[%s2034_s11 + $0x8] sm:$0xff]  ;;  %v203_v12 = vld [vmem:[%s2034_s11 + $0x20] sm:$0xff]  ;;  %v206_v15 = vld [vmem:[%s2034_s11 + $0x38] sm:$0xff]  ;;  %p1890_p2 = por %p1889_p1, %p1888_p0 }
  0x18   : > { %1551 = vmatpush3.msra.mxu0 %v439_v2  ;;  %234 = vperm.xlu0 %1751, %v199_v6   ;;  %v204_v11 = vld [vmem:[%s2034_s11 + $0x28] sm:$0xff]  ;;  %v205_v16 = vld [vmem:[%s2034_s11 + $0x30] sm:$0xff]  ;;  %v207_v19 = vld [vmem:[%s2034_s11 + $0x40] sm:$0xff]  ;;  %v1944_v2 = vmov 1.0   ;;  %p1884_p13 = pneg %p1883_p12 }
  0x19   : > { %1552 = vmatprep.subr.mxu0 %v438_v3  ;;  %v208_v18 = vld [vmem:[%s2034_s11 + $0x48] sm:$0xff]  ;;  %v431_v20 = vld [vmem:[%s2603_s1 + $0x30] sm:$0xff]  ;;  %v210_v22 = vld [vmem:[%s2034_s11 + $0x58] sm:$0xff] }
  0x1a   : > { %1553 = vmatpush3.msra.mxu0 %v438_v3  ;;  %v430_v21 = vld [vmem:[%s2603_s1 + $0x28] sm:$0xff]  ;;  %v209_v23 = vld [vmem:[%s2034_s11 + $0x50] sm:$0xff]  ;;  %v429_v24 = vld [vmem:[%s2603_s1 + $0x20] sm:$0xff]  ;;  %p1891_p3 = pnand %p1890_p2, %p1884_p13 }
  0x1b   : > { %1554 = vmatprep.subr.mxu0 %v437_v4  ;;  %243 = vperm.xlu1 %1752, %v202_v8   ;;  %v212_v25 = vld [vmem:[%s2034_s11 + $0x68] sm:$0xff]  ;;  %v211_v26 = vld [vmem:[%s2034_s11 + $0x60] sm:$0xff]  ;;  %v428_v27 = vld [vmem:[%s2603_s1 + $0x18] sm:$0xff] }
  0x1c   : > { %1555 = vmatpush3.msra.mxu0 %v437_v4  ;;  %237 = vperm.xlu0 %1751, %v200_v9   ;;  %v427_v28 = vld [vmem:[%s2603_s1 + $0x10] sm:$0xff]  ;;  %v214_v29 = vld [vmem:[%s2034_s11 + $0x78] sm:$0xff]  ;;  %v426_v31 = vld [vmem:[%s2603_s1 + $0x8] sm:$0xff] }
  0x1d   : > { %1556 = vmatprep.subr.mxu0 %v436_v7  ;;  %v213_v30 = vld [vmem:[%s2034_s11 + $0x70] sm:$0xff]  ;;  %v216_v32 = vld [vmem:[%s2034_s11 + $0x88] sm:$0xff]  ;;  %v215_v33 = vld [vmem:[%s2034_s11 + $0x80] sm:$0xff] }
  0x1e   : > { %1557 = vmatpush3.msra.mxu0 %v436_v7  ;;  %v425_v34 = vld [vmem:[%s2603_s1] sm:$0xff]  ;;  %v218_v35 = vld [vmem:[%s2034_s11 + $0x98] sm:$0xff]  ;;  %v217_v36 = vld [vmem:[%s2034_s11 + $0x90] sm:$0xff] }
  0x1f   : > { %1558 = vmatprep.subr.mxu0 %v435_v10  ;;  %249 = vperm.xlu1 %1752, %v204_v11   ;;  %v220_v37 = vld [vmem:[%s2034_s11 + $0xa8] sm:$0xff]  ;;  %v219_v38 = vld [vmem:[%s2034_s11 + $0xa0] sm:$0xff]  ;;  %v222_v39 = vld [vmem:[%s2034_s11 + $0xb8] sm:$0xff] }
  0x20   : > { %1559 = vmatpush3.msra.mxu0 %v435_v10  ;;  %246 = vperm.xlu0 %1751, %v203_v12   ;;  %v221_v40 = vld [vmem:[%s2034_s11 + $0xb0] sm:$0xff]  ;;  %v224_v41 = vld [vmem:[%s2034_s11 + $0xc8] sm:$0xff]  ;;  %v223_v42 = vld [vmem:[%s2034_s11 + $0xc0] sm:$0xff] }
  0x21   : > { %1560 = vmatprep.subr.mxu0 %v434_v13  ;;  %v226_v43 = vld [vmem:[%s2034_s11 + $0xd8] sm:$0xff]  ;;  %v225_v44 = vld [vmem:[%s2034_s11 + $0xd0] sm:$0xff]  ;;  %v228_v45 = vld [vmem:[%s2034_s11 + $0xe8] sm:$0xff] }
  0x22   : > { %1561 = vmatpush3.msra.mxu0 %v434_v13  ;;  %v227_v46 = vld [vmem:[%s2034_s11 + $0xe0] sm:$0xff]  ;;  %v230_v47 = vld [vmem:[%s2034_s11 + $0xf8] sm:$0xff]  ;;  %v229_v48 = vld [vmem:[%s2034_s11 + $0xf0] sm:$0xff]  ;;  %s2553_s11 = scalar_lea.hbm %s2606_s4, %s1451_s8 }
  0x23   : > { %1562 = vmatprep.subr.mxu0 %v433_v14  ;;  %255 = vperm.xlu1 %1752, %v206_v15   ;;  %v713_v49 = vld [vmem:[%s2604_s2 + $0x78] sm:$0xff]  ;;  %v712_v50 = vld [vmem:[%s2604_s2 + $0x70] sm:$0xff]  ;;  %v711_v51 = vld [vmem:[%s2604_s2 + $0x68] sm:$0xff] }
  0x24   : > { %252 = vperm.xlu0 %1751, %v205_v16   ;;  %1563 = vmatpush3.msra.mxu0 %v433_v14  ;;  %v710_v52 = vld [vmem:[%s2604_s2 + $0x60] sm:$0xff]  ;;  %v709_v53 = vld [vmem:[%s2604_s2 + $0x58] sm:$0xff]  ;;  %v708_v54 = vld [vmem:[%s2604_s2 + $0x50] sm:$0xff] }
  0x25   : > { %1564 = vmatprep.subr.mxu0 %v432_v17  ;;  %1628 = vmatprep.subr.mxu1 %v713_v49  ;;  %v707_v55 = vld [vmem:[%s2604_s2 + $0x48] sm:$0xff]  ;;  %v706_v56 = vld [vmem:[%s2604_s2 + $0x40] sm:$0xff]  ;;  %v705_v57 = vld [vmem:[%s2604_s2 + $0x38] sm:$0xff] }
  0x26   : > { %1565 = vmatpush3.msra.mxu0 %v432_v17  ;;  %1629 = vmatpush3.msra.mxu1 %v713_v49  ;;  %v704_v58 = vld [vmem:[%s2604_s2 + $0x30] sm:$0xff]  ;;  %v703_v59 = vld [vmem:[%s2604_s2 + $0x28] sm:$0xff]  ;;  %v702_v60 = vld [vmem:[%s2604_s2 + $0x20] sm:$0xff] }
  0x27   : > { %261 = vperm.xlu1 %1752, %v208_v18   ;;  %1566 = vmatprep.subr.mxu0 %v431_v20  ;;  %v701_v61 = vld [vmem:[%s2604_s2 + $0x18] sm:$0xff] }
  0x28   : > { %258 = vperm.xlu0 %1751, %v207_v19   ;;  %1567 = vmatpush3.msra.mxu0 %v431_v20 }
  0x29   : > { %1568 = vmatprep.subr.mxu0 %v430_v21  ;;  %1630 = vmatprep.subr.mxu1 %v712_v50 }
  0x2a   : > { %1569 = vmatpush3.msra.mxu0 %v430_v21  ;;  %1631 = vmatpush3.msra.mxu1 %v712_v50 }
  0x2b   : > { %267 = vperm.xlu1 %1752, %v210_v22   ;;  %1570 = vmatprep.subr.mxu0 %v429_v24 }
  0x2c   : > { %264 = vperm.xlu0 %1751, %v209_v23   ;;  %1571 = vmatpush3.msra.mxu0 %v429_v24 }
  0x2d   : > { %1572 = vmatprep.subr.mxu0 %v428_v27  ;;  %1632 = vmatprep.subr.mxu1 %v711_v51 }
  0x2e   : > { %1573 = vmatpush3.msra.mxu0 %v428_v27  ;;  %1633 = vmatpush3.msra.mxu1 %v711_v51 }
  0x2f   : > { %273 = vperm.xlu1 %1752, %v212_v25   ;;  %1574 = vmatprep.subr.mxu0 %v427_v28 }
  0x30   : > { %270 = vperm.xlu0 %1751, %v211_v26   ;;  %1575 = vmatpush3.msra.mxu0 %v427_v28 }
  0x31   : > { %1576 = vmatprep.subr.mxu0 %v426_v31  ;;  %1634 = vmatprep.subr.mxu1 %v710_v52 }
  0x32   : > { %1577 = vmatpush3.msra.mxu0 %v426_v31  ;;  %1635 = vmatpush3.msra.mxu1 %v710_v52 }
  0x33   : > { %279 = vperm.xlu1 %1752, %v214_v29   ;;  %1578 = vmatprep.subr.mxu0 %v425_v34 }
  0x34   : > { %276 = vperm.xlu0 %1751, %v213_v30   ;;  %1579 = vmatpush3.msra.mxu0 %v425_v34  ;;  %v699_v34 = vld [vmem:[%s2604_s2 + $0x8] sm:$0xff] }
  0x35   : > { %1636 = vmatprep.subr.mxu1 %v709_v53 }
  0x36   : > { %1637 = vmatpush3.msra.mxu1 %v709_v53 }
  0x37   : > { %285 = vperm.xlu1 %1752, %v216_v32   ;;  %1638 = vmatprep.subr.mxu1 %v708_v54 }
  0x38   : > { %282 = vperm.xlu0 %1751, %v215_v33   ;;  %1639 = vmatpush3.msra.mxu1 %v708_v54  ;;  %v700_v33 = vld [vmem:[%s2604_s2 + $0x10] sm:$0xff] }
  0x39   : > { %1640 = vmatprep.subr.mxu1 %v707_v55 }
  0x3a   : > { %1641 = vmatpush3.msra.mxu1 %v707_v55 }
  0x3b   : > { %291 = vperm.xlu1 %1752, %v218_v35   ;;  %1642 = vmatprep.subr.mxu1 %v706_v56  ;;  %v698_v35 = vld [vmem:[%s2604_s2] sm:$0xff] }
  0x3c   : > { %288 = vperm.xlu0 %1751, %v217_v36   ;;  %1643 = vmatpush3.msra.mxu1 %v706_v56 }
  0x3d   : > { %1644 = vmatprep.subr.mxu1 %v705_v57 }
  0x3e   : > { %1645 = vmatpush3.msra.mxu1 %v705_v57 }
  0x3f   : > { %297 = vperm.xlu1 %1752, %v220_v37   ;;  %1646 = vmatprep.subr.mxu1 %v704_v58 }
  0x40   : > { %294 = vperm.xlu0 %1751, %v219_v38   ;;  %1647 = vmatpush3.msra.mxu1 %v704_v58 }
  0x41   : > { %1648 = vmatprep.subr.mxu1 %v703_v59 }
  0x42   : > { %1649 = vmatpush3.msra.mxu1 %v703_v59 }
  0x43   : > { %303 = vperm.xlu1 %1752, %v222_v39   ;;  %1650 = vmatprep.subr.mxu1 %v702_v60 }
  0x44   : > { %300 = vperm.xlu0 %1751, %v221_v40   ;;  %1651 = vmatpush3.msra.mxu1 %v702_v60 }
  0x45   : > { %1652 = vmatprep.subr.mxu1 %v701_v61 }
  0x46   : > { %1653 = vmatpush3.msra.mxu1 %v701_v61 }
  0x47   : > { %309 = vperm.xlu1 %1752, %v224_v41   ;;  %1654 = vmatprep.subr.mxu1 %v700_v33 }
  0x48   : > { %306 = vperm.xlu0 %1751, %v223_v42   ;;  %1655 = vmatpush3.msra.mxu1 %v700_v33 }
  0x49   : > { %1656 = vmatprep.subr.mxu1 %v699_v34 }
  0x4a   : > { %1657 = vmatpush3.msra.mxu1 %v699_v34 }
  0x4b   : > { %315 = vperm.xlu1 %1752, %v226_v43   ;;  %1658 = vmatprep.subr.mxu1 %v698_v35 }
  0x4c   : > { %312 = vperm.xlu0 %1751, %v225_v44   ;;  %1659 = vmatpush3.msra.mxu1 %v698_v35 }
  0x4f   : > { %321 = vperm.xlu1 %1752, %v228_v45  }
  0x50   : > { %318 = vperm.xlu0 %1751, %v227_v46  }
  0x53   : > { %327 = vperm.xlu1 %1752, %v230_v47  }
  0x54   : > { %324 = vperm.xlu0 %1751, %v229_v48  }
  0x92   : > { %v241_v0 = vpop.permute.xlu1 %240 }
  0x93   : > { %v235_v1 = vpop.permute.xlu0 %234  ;;  %vm331_vm1 = vcmp.eq.s32.totalorder %v2146_v63, %v241_v0 }
  0x94   : > { %vm329_vm0 = vcmp.eq.s32.totalorder %v2146_v63, %v235_v1 }
  0x95   : > { %1580 = vmatprep.mubr.msk.f32.mxu0 %vm329_vm0, %v1944_v2 }
  0x96   : > { %v244_v3 = vpop.permute.xlu1 %243 }
  0x97   : > { %v238_v4 = vpop.permute.xlu0 %237  ;;  %vm332_vm3 = vcmp.eq.s32.totalorder %v2146_v63, %v244_v3 }
  0x98   : > { %vm330_vm2 = vcmp.eq.s32.totalorder %v2146_v63, %v238_v4 }
  0x99   : > { %1581 = vmatmul.mubr.msk.f32.vlgmr.msra.gmra.mxu0 %vm330_vm2, %v1944_v2 }
  0x9a   : > { %1583 = vmatprep.mubr.msk.f32.mxu0 %vm331_vm1, %v1944_v2  ;;  %v250_v5 = vpop.permute.xlu1 %249 }
  0x9b   : > { %v247_v6 = vpop.permute.xlu0 %246  ;;  %vm334_vm5 = vcmp.eq.s32.totalorder %v2146_v63, %v250_v5 }
  0x9c   : > { %vm333_vm4 = vcmp.eq.s32.totalorder %v2146_v63, %v247_v6 }
  0x9d   : > { %1584 = vmatmul.mubr.msk.f32.gmra.mxu0 %vm332_vm3, %v1944_v2 }
  0x9e   : > { %1586 = vmatprep.mubr.msk.f32.mxu0 %vm333_vm4, %v1944_v2  ;;  %v256_v7 = vpop.permute.xlu1 %255 }
  0x9f   : > { %v253_v8 = vpop.permute.xlu0 %252  ;;  %vm336_vm7 = vcmp.eq.s32.totalorder %v2146_v63, %v256_v7 }
  0xa0   : > { %vm335_vm6 = vcmp.eq.s32.totalorder %v2146_v63, %v253_v8 }
  0xa1   : > { %1587 = vmatmul.mubr.msk.f32.gmra.mxu0 %vm334_vm5, %v1944_v2 }
  0xa2   : > { %1589 = vmatprep.mubr.msk.f32.mxu0 %vm335_vm6, %v1944_v2  ;;  %v262_v9 = vpop.permute.xlu1 %261 }
  0xa3   : > { %v259_v10 = vpop.permute.xlu0 %258  ;;  %vm338_vm9 = vcmp.eq.s32.totalorder %v2146_v63, %v262_v9 }
  0xa4   : > { %vm337_vm8 = vcmp.eq.s32.totalorder %v2146_v63, %v259_v10 }
  0xa5   : > { %1590 = vmatmul.mubr.msk.f32.gmra.mxu0 %vm336_vm7, %v1944_v2 }
  0xa6   : > { %1592 = vmatprep.mubr.msk.f32.mxu0 %vm337_vm8, %v1944_v2  ;;  %v268_v11 = vpop.permute.xlu1 %267 }
  0xa7   : > { %v265_v12 = vpop.permute.xlu0 %264  ;;  %vm340_vm11 = vcmp.eq.s32.totalorder %v2146_v63, %v268_v11 }
  0xa8   : > { %vm339_vm10 = vcmp.eq.s32.totalorder %v2146_v63, %v265_v12 }
  0xa9   : > { %1593 = vmatmul.mubr.msk.f32.gmra.mxu0 %vm338_vm9, %v1944_v2 }
  0xaa   : > { %1595 = vmatprep.mubr.msk.f32.mxu0 %vm339_vm10, %v1944_v2  ;;  %v274_v13 = vpop.permute.xlu1 %273 }
  0xab   : > { %v271_v14 = vpop.permute.xlu0 %270  ;;  %vm342_vm13 = vcmp.eq.s32.totalorder %v2146_v63, %v274_v13 }
  0xac   : > { %vm341_vm12 = vcmp.eq.s32.totalorder %v2146_v63, %v271_v14 }
  0xad   : > { %1596 = vmatmul.mubr.msk.f32.gmra.mxu0 %vm340_vm11, %v1944_v2 }
  0xae   : > { %1598 = vmatprep.mubr.msk.f32.mxu0 %vm341_vm12, %v1944_v2  ;;  %v280_v15 = vpop.permute.xlu1 %279 }
  0xaf   : > { %v277_v16 = vpop.permute.xlu0 %276  ;;  %vm344_vm15 = vcmp.eq.s32.totalorder %v2146_v63, %v280_v15 }
  0xb0   : > { %vm343_vm14 = vcmp.eq.s32.totalorder %v2146_v63, %v277_v16 }
  0xb1   : > { %1599 = vmatmul.mubr.msk.f32.gmra.mxu0 %vm342_vm13, %v1944_v2 }
  0xb2   : > { %1601 = vmatprep.mubr.msk.f32.mxu0 %vm343_vm14, %v1944_v2  ;;  %v286_v17 = vpop.permute.xlu1 %285 }
  0xb3   : > { %v283_v18 = vpop.permute.xlu0 %282  ;;  %vm346_vm1 = vcmp.eq.s32.totalorder %v2146_v63, %v286_v17 }
  0xb4   : > { %vm345_vm0 = vcmp.eq.s32.totalorder %v2146_v63, %v283_v18 }
  0xb5   : > { %1602 = vmatmul.mubr.msk.f32.gmra.mxu0 %vm344_vm15, %v1944_v2 }
  0xb6   : > { %1604 = vmatprep.mubr.msk.f32.mxu0 %vm345_vm0, %v1944_v2  ;;  %v292_v19 = vpop.permute.xlu1 %291 }
  0xb7   : > { %v289_v20 = vpop.permute.xlu0 %288  ;;  %vm348_vm3 = vcmp.eq.s32.totalorder %v2146_v63, %v292_v19 }
  0xb8   : > { %vm347_vm2 = vcmp.eq.s32.totalorder %v2146_v63, %v289_v20 }
  0xb9   : > { %1605 = vmatmul.mubr.msk.f32.gmra.mxu0 %vm346_vm1, %v1944_v2 }
  0xba   : > { %1607 = vmatprep.mubr.msk.f32.mxu0 %vm347_vm2, %v1944_v2  ;;  %v298_v21 = vpop.permute.xlu1 %297 }
  0xbb   : > { %v295_v22 = vpop.permute.xlu0 %294  ;;  %vm350_vm5 = vcmp.eq.s32.totalorder %v2146_v63, %v298_v21 }
  0xbc   : > { %vm349_vm4 = vcmp.eq.s32.totalorder %v2146_v63, %v295_v22 }
  0xbd   : > { %1608 = vmatmul.mubr.msk.f32.gmra.mxu0 %vm348_vm3, %v1944_v2 }
  0xbe   : > { %1610 = vmatprep.mubr.msk.f32.mxu0 %vm349_vm4, %v1944_v2  ;;  %v304_v23 = vpop.permute.xlu1 %303 }
  0xbf   : > { %v301_v24 = vpop.permute.xlu0 %300  ;;  %vm352_vm7 = vcmp.eq.s32.totalorder %v2146_v63, %v304_v23 }
  0xc0   : > { %vm351_vm6 = vcmp.eq.s32.totalorder %v2146_v63, %v301_v24 }
  0xc1   : > { %1611 = vmatmul.mubr.msk.f32.gmra.mxu0 %vm350_vm5, %v1944_v2 }
  0xc2   : > { %1613 = vmatprep.mubr.msk.f32.mxu0 %vm351_vm6, %v1944_v2  ;;  %v310_v25 = vpop.permute.xlu1 %309 }
  0xc3   : > { %v307_v26 = vpop.permute.xlu0 %306  ;;  %vm354_vm9 = vcmp.eq.s32.totalorder %v2146_v63, %v310_v25 }
  0xc4   : > { %vm353_vm8 = vcmp.eq.s32.totalorder %v2146_v63, %v307_v26 }
  0xc5   : > { %1614 = vmatmul.mubr.msk.f32.gmra.mxu0 %vm352_vm7, %v1944_v2 }
  0xc6   : > { %1616 = vmatprep.mubr.msk.f32.mxu0 %vm353_vm8, %v1944_v2  ;;  %v316_v27 = vpop.permute.xlu1 %315 }
  0xc7   : > { %v313_v28 = vpop.permute.xlu0 %312  ;;  %vm356_vm11 = vcmp.eq.s32.totalorder %v2146_v63, %v316_v27 }
  0xc8   : > { %vm355_vm10 = vcmp.eq.s32.totalorder %v2146_v63, %v313_v28 }
  0xc9   : > { %1617 = vmatmul.mubr.msk.f32.gmra.mxu0 %vm354_vm9, %v1944_v2 }
  0xca   : > { %1619 = vmatprep.mubr.msk.f32.mxu0 %vm355_vm10, %v1944_v2  ;;  %v322_v29 = vpop.permute.xlu1 %321 }
  0xcb   : > { %v319_v30 = vpop.permute.xlu0 %318  ;;  %vm358_vm13 = vcmp.eq.s32.totalorder %v2146_v63, %v322_v29 }
  0xcc   : > { %vm357_vm12 = vcmp.eq.s32.totalorder %v2146_v63, %v319_v30 }
  0xcd   : > { %1620 = vmatmul.mubr.msk.f32.gmra.mxu0 %vm356_vm11, %v1944_v2 }
  0xce   : > { %1622 = vmatprep.mubr.msk.f32.mxu0 %vm357_vm12, %v1944_v2  ;;  %v328_v32 = vpop.permute.xlu1 %327 }
  0xcf   : > { %v325_v31 = vpop.permute.xlu0 %324  ;;  %vm360_vm15 = vcmp.eq.s32.totalorder %v2146_v63, %v328_v32 }
  0xd0   : > { %vm359_vm14 = vcmp.eq.s32.totalorder %v2146_v63, %v325_v31 }
  0xd1   : > { %1623 = vmatmul.mubr.msk.f32.gmra.mxu0 %vm358_vm13, %v1944_v2 }
  0xd2   : > { %1625 = vmatprep.mubr.msk.f32.mxu0 %vm359_vm14, %v1944_v2 }
  0xd5   : > { %1626 = vmatmul.mubr.msk.f32.gmra.mxu0 %vm360_vm15, %v1944_v2 }
 0x159   : > { %v1582_v36 = vpop.f32.mrf.mxu0 }
 0x15a   : > { %v667_v39 = vmax.f32 %v1582_v36, 0.0  ;;  %v2224_v36 = vld [vmem:[%s2605_s3] ss:$0 sm:$0xff] }
 0x15b   : > { %v507_v37 = vpop.f32.mrf.mxu0 }
 0x15c   : > { %v666_v38 = vmax.f32 %v507_v37, 0.0 }
 0x15d   : > { %v1585_v40 = vpop.f32.mrf.mxu0 }
 0x15e   : > { %1660 = vmatprep.mubr.f32.mxu1 %v666_v38  ;;  %v669_v43 = vmax.f32 %v1585_v40, 0.0 }
 0x15f   : > { %v517_v41 = vpop.f32.mrf.mxu0  ;;  %1661 = vmatmul.mubr.f32.vlgmr.msra.gmra.mxu1 %v667_v39 }
 0x160   : > { %v668_v42 = vmax.f32 %v517_v41, 0.0 }
 0x161   : > { %v1588_v44 = vpop.f32.mrf.mxu0 }
 0x162   : > { %1663 = vmatprep.mubr.f32.mxu1 %v668_v42  ;;  %v671_v47 = vmax.f32 %v1588_v44, 0.0 }
 0x163   : > { %v527_v45 = vpop.f32.mrf.mxu0  ;;  %1664 = vmatmul.mubr.f32.gmra.mxu1 %v669_v43 }
 0x164   : > { %v670_v46 = vmax.f32 %v527_v45, 0.0 }
 0x165   : > { %v1591_v48 = vpop.f32.mrf.mxu0 }
 0x166   : > { %1666 = vmatprep.mubr.f32.mxu1 %v670_v46  ;;  %v673_v51 = vmax.f32 %v1591_v48, 0.0 }
 0x167   : > { %v537_v49 = vpop.f32.mrf.mxu0  ;;  %1667 = vmatmul.mubr.f32.gmra.mxu1 %v671_v47 }
 0x168   : > { %v672_v50 = vmax.f32 %v537_v49, 0.0 }
 0x169   : > { %v1594_v52 = vpop.f32.mrf.mxu0 }
 0x16a   : > { %1669 = vmatprep.mubr.f32.mxu1 %v672_v50  ;;  %v675_v55 = vmax.f32 %v1594_v52, 0.0 }
 0x16b   : > { %v547_v53 = vpop.f32.mrf.mxu0  ;;  %1670 = vmatmul.mubr.f32.gmra.mxu1 %v673_v51 }
 0x16c   : > { %v674_v54 = vmax.f32 %v547_v53, 0.0 }
 0x16d   : > { %v1597_v56 = vpop.f32.mrf.mxu0 }
 0x16e   : > { %1672 = vmatprep.mubr.f32.mxu1 %v674_v54  ;;  %v677_v59 = vmax.f32 %v1597_v56, 0.0 }
 0x16f   : > { %v557_v57 = vpop.f32.mrf.mxu0  ;;  %1673 = vmatmul.mubr.f32.gmra.mxu1 %v675_v55 }
 0x170   : > { %v676_v58 = vmax.f32 %v557_v57, 0.0 }
 0x171   : > { %v1600_v60 = vpop.f32.mrf.mxu0 }
 0x172   : > { %1675 = vmatprep.mubr.f32.mxu1 %v676_v58  ;;  %v679_v63 = vmax.f32 %v1600_v60, 0.0 }
 0x173   : > { %v567_v61 = vpop.f32.mrf.mxu0  ;;  %1676 = vmatmul.mubr.f32.gmra.mxu1 %v677_v59 }
 0x174   : > { %v678_v62 = vmax.f32 %v567_v61, 0.0 }
 0x175   : > { %v1603_v0 = vpop.f32.mrf.mxu0 }
 0x176   : > { %1678 = vmatprep.mubr.f32.mxu1 %v678_v62  ;;  %v681_v3 = vmax.f32 %v1603_v0, 0.0 }
 0x177   : > { %v577_v1 = vpop.f32.mrf.mxu0  ;;  %1679 = vmatmul.mubr.f32.gmra.mxu1 %v679_v63 }
 0x178   : > { %v680_v2 = vmax.f32 %v577_v1, 0.0 }
 0x179   : > { %v1606_v4 = vpop.f32.mrf.mxu0 }
 0x17a   : > { %1681 = vmatprep.mubr.f32.mxu1 %v680_v2  ;;  %v683_v7 = vmax.f32 %v1606_v4, 0.0 }
 0x17b   : > { %v587_v5 = vpop.f32.mrf.mxu0  ;;  %1682 = vmatmul.mubr.f32.gmra.mxu1 %v681_v3 }
 0x17c   : > { %v682_v6 = vmax.f32 %v587_v5, 0.0 }
 0x17d   : > { %v1609_v8 = vpop.f32.mrf.mxu0 }
 0x17e   : > { %1684 = vmatprep.mubr.f32.mxu1 %v682_v6  ;;  %v685_v11 = vmax.f32 %v1609_v8, 0.0 }
 0x17f   : > { %v597_v9 = vpop.f32.mrf.mxu0  ;;  %1685 = vmatmul.mubr.f32.gmra.mxu1 %v683_v7 }
 0x180   : > { %v684_v10 = vmax.f32 %v597_v9, 0.0 }
 0x181   : > { %v1612_v12 = vpop.f32.mrf.mxu0 }
 0x182   : > { %1687 = vmatprep.mubr.f32.mxu1 %v684_v10  ;;  %v687_v15 = vmax.f32 %v1612_v12, 0.0 }
 0x183   : > { %v607_v13 = vpop.f32.mrf.mxu0  ;;  %1688 = vmatmul.mubr.f32.gmra.mxu1 %v685_v11 }
 0x184   : > { %v686_v14 = vmax.f32 %v607_v13, 0.0 }
 0x185   : > { %v1615_v16 = vpop.f32.mrf.mxu0 }
 0x186   : > { %1690 = vmatprep.mubr.f32.mxu1 %v686_v14  ;;  %v689_v19 = vmax.f32 %v1615_v16, 0.0 }
 0x187   : > { %v617_v17 = vpop.f32.mrf.mxu0  ;;  %1691 = vmatmul.mubr.f32.gmra.mxu1 %v687_v15 }
 0x188   : > { %v688_v18 = vmax.f32 %v617_v17, 0.0 }
 0x189   : > { %v1618_v20 = vpop.f32.mrf.mxu0 }
 0x18a   : > { %1693 = vmatprep.mubr.f32.mxu1 %v688_v18  ;;  %v691_v23 = vmax.f32 %v1618_v20, 0.0 }
 0x18b   : > { %v627_v21 = vpop.f32.mrf.mxu0  ;;  %1694 = vmatmul.mubr.f32.gmra.mxu1 %v689_v19 }
 0x18c   : > { %v690_v22 = vmax.f32 %v627_v21, 0.0 }
 0x18d   : > { %v1621_v24 = vpop.f32.mrf.mxu0 }
 0x18e   : > { %1696 = vmatprep.mubr.f32.mxu1 %v690_v22  ;;  %v693_v27 = vmax.f32 %v1621_v24, 0.0 }
 0x18f   : > { %v637_v25 = vpop.f32.mrf.mxu0  ;;  %1697 = vmatmul.mubr.f32.gmra.mxu1 %v691_v23 }
 0x190   : > { %v692_v26 = vmax.f32 %v637_v25, 0.0 }
 0x191   : > { %v1624_v28 = vpop.f32.mrf.mxu0 }
 0x192   : > { %1699 = vmatprep.mubr.f32.mxu1 %v692_v26  ;;  %v695_v31 = vmax.f32 %v1624_v28, 0.0 }
 0x193   : > { %v647_v29 = vpop.f32.mrf.mxu0  ;;  %1700 = vmatmul.mubr.f32.gmra.mxu1 %v693_v27 }
 0x194   : > { %v694_v30 = vmax.f32 %v647_v29, 0.0 }
 0x195   : > { %v1627_v32 = vpop.f32.mrf.mxu0 }
 0x196   : > { %1702 = vmatprep.mubr.f32.mxu1 %v694_v30  ;;  %v697_v35 = vmax.f32 %v1627_v32, 0.0 }
 0x197   : > { %v657_v33 = vpop.f32.mrf.mxu0  ;;  %1703 = vmatmul.mubr.f32.gmra.mxu1 %v695_v31 }
 0x198   : > { %v696_v34 = vmax.f32 %v657_v33, 0.0 }
 0x19a   : > { %1705 = vmatprep.mubr.f32.mxu1 %v696_v34 }
 0x19b   : > { %1706 = vmatmul.mubr.f32.gmra.mxu1 %v697_v35 }
 0x21f   : > { %v1662_v37 = vpop.f32.mrf.mxu1 }
 0x220   : > { %v2227_v38 = vadd.f32 %v1662_v37, %v2224_v36 }
 0x221   : > { %v787_v39 = vpop.f32.mrf.mxu1 }
 0x222   : > { %v2230_v40 = vadd.f32 %v2224_v36, %v787_v39  ;;  %948 = vmax.xlane.f32.xlu1 %v2227_v38 }
 0x223   : > { %v1665_v41 = vpop.f32.mrf.mxu1 }
 0x224   : > { %946 = vmax.xlane.f32.xlu0 %v2230_v40  ;;  %v2235_v43 = vadd.f32 %v1665_v41, %v2224_v36 }
 0x225   : > { %v797_v42 = vpop.f32.mrf.mxu1 }
 0x226   : > { %v2239_v46 = vadd.f32 %v2224_v36, %v797_v42 }
 0x227   : > { %v1668_v44 = vpop.f32.mrf.mxu1 }
 0x228   : > { %952 = vmax.xlane.f32.xlu0 %v2235_v43  ;;  %v2247_v50 = vadd.f32 %v1668_v44, %v2224_v36 }
 0x229   : > { %v807_v45 = vpop.f32.mrf.mxu1 }
 0x22a   : > { %v2242_v47 = vadd.f32 %v2224_v36, %v807_v45 }
 0x22b   : > { %v1671_v48 = vpop.f32.mrf.mxu1 }
 0x22c   : > { %950 = vmax.xlane.f32.xlu0 %v2239_v46  ;;  %954 = vmax.xlane.f32.xlu1 %v2242_v47  ;;  %v2255_v54 = vadd.f32 %v1671_v48, %v2224_v36 }
 0x22d   : > { %v817_v49 = vpop.f32.mrf.mxu1 }
 0x22e   : > { %v2250_v51 = vadd.f32 %v2224_v36, %v817_v49 }
 0x22f   : > { %v1674_v52 = vpop.f32.mrf.mxu1 }
 0x230   : > { %956 = vmax.xlane.f32.xlu0 %v2247_v50  ;;  %958 = vmax.xlane.f32.xlu1 %v2250_v51  ;;  %v2263_v58 = vadd.f32 %v1674_v52, %v2224_v36 }
 0x231   : > { %v827_v53 = vpop.f32.mrf.mxu1 }
 0x232   : > { %v2258_v55 = vadd.f32 %v2224_v36, %v827_v53 }
 0x233   : > { %v1677_v56 = vpop.f32.mrf.mxu1 }
 0x234   : > { %960 = vmax.xlane.f32.xlu0 %v2255_v54  ;;  %962 = vmax.xlane.f32.xlu1 %v2258_v55  ;;  %v2271_v62 = vadd.f32 %v1677_v56, %v2224_v36 }
 0x235   : > { %v837_v57 = vpop.f32.mrf.mxu1 }
 0x236   : > { %v2266_v59 = vadd.f32 %v2224_v36, %v837_v57 }
 0x237   : > { %v1680_v60 = vpop.f32.mrf.mxu1 }
 0x238   : > { %964 = vmax.xlane.f32.xlu0 %v2263_v58  ;;  %966 = vmax.xlane.f32.xlu1 %v2266_v59  ;;  %v2279_v2 = vadd.f32 %v1680_v60, %v2224_v36 }
 0x239   : > { %v847_v61 = vpop.f32.mrf.mxu1 }
 0x23a   : > { %v2274_v63 = vadd.f32 %v2224_v36, %v847_v61 }
 0x23b   : > { %v1683_v0 = vpop.f32.mrf.mxu1 }
 0x23c   : > { %968 = vmax.xlane.f32.xlu0 %v2271_v62  ;;  %970 = vmax.xlane.f32.xlu1 %v2274_v63  ;;  %v2287_v6 = vadd.f32 %v1683_v0, %v2224_v36 }
 0x23d   : > { %v857_v1 = vpop.f32.mrf.mxu1 }
 0x23e   : > { %v2282_v3 = vadd.f32 %v2224_v36, %v857_v1 }
 0x23f   : > { %v1686_v4 = vpop.f32.mrf.mxu1 }
 0x240   : > { %972 = vmax.xlane.f32.xlu0 %v2279_v2  ;;  %974 = vmax.xlane.f32.xlu1 %v2282_v3  ;;  %v2295_v10 = vadd.f32 %v1686_v4, %v2224_v36 }
 0x241   : > { %v867_v5 = vpop.f32.mrf.mxu1 }
 0x242   : > { %v2290_v7 = vadd.f32 %v2224_v36, %v867_v5 }
 0x243   : > { %v1689_v8 = vpop.f32.mrf.mxu1 }
 0x244   : > { %976 = vmax.xlane.f32.xlu0 %v2287_v6  ;;  %978 = vmax.xlane.f32.xlu1 %v2290_v7  ;;  %v2303_v14 = vadd.f32 %v1689_v8, %v2224_v36 }
 0x245   : > { %v877_v9 = vpop.f32.mrf.mxu1 }
 0x246   : > { %v2298_v11 = vadd.f32 %v2224_v36, %v877_v9 }
 0x247   : > { %v1692_v12 = vpop.f32.mrf.mxu1 }
 0x248   : > { %980 = vmax.xlane.f32.xlu0 %v2295_v10  ;;  %982 = vmax.xlane.f32.xlu1 %v2298_v11  ;;  %v2311_v18 = vadd.f32 %v1692_v12, %v2224_v36 }
 0x249   : > { %v887_v13 = vpop.f32.mrf.mxu1 }
 0x24a   : > { %v2306_v15 = vadd.f32 %v2224_v36, %v887_v13 }
 0x24b   : > { %v1695_v16 = vpop.f32.mrf.mxu1 }
 0x24c   : > { %984 = vmax.xlane.f32.xlu0 %v2303_v14  ;;  %986 = vmax.xlane.f32.xlu1 %v2306_v15  ;;  %v2319_v22 = vadd.f32 %v1695_v16, %v2224_v36 }
 0x24d   : > { %v897_v17 = vpop.f32.mrf.mxu1 }
 0x24e   : > { %v2314_v19 = vadd.f32 %v2224_v36, %v897_v17 }
 0x24f   : > { %v1698_v20 = vpop.f32.mrf.mxu1 }
 0x250   : > { %988 = vmax.xlane.f32.xlu0 %v2311_v18  ;;  %990 = vmax.xlane.f32.xlu1 %v2314_v19  ;;  %v2327_v26 = vadd.f32 %v1698_v20, %v2224_v36 }
 0x251   : > { %v907_v21 = vpop.f32.mrf.mxu1 }
 0x252   : > { %v2322_v23 = vadd.f32 %v2224_v36, %v907_v21 }
 0x253   : > { %v1701_v24 = vpop.f32.mrf.mxu1 }
 0x254   : > { %992 = vmax.xlane.f32.xlu0 %v2319_v22  ;;  %994 = vmax.xlane.f32.xlu1 %v2322_v23  ;;  %v2335_v30 = vadd.f32 %v1701_v24, %v2224_v36 }
 0x255   : > { %v917_v25 = vpop.f32.mrf.mxu1 }
 0x256   : > { %v2330_v27 = vadd.f32 %v2224_v36, %v917_v25 }
 0x257   : > { %v1704_v28 = vpop.f32.mrf.mxu1 }
 0x258   : > { %996 = vmax.xlane.f32.xlu0 %v2327_v26  ;;  %998 = vmax.xlane.f32.xlu1 %v2330_v27  ;;  %v2343_v34 = vadd.f32 %v1704_v28, %v2224_v36 }
 0x259   : > { %v927_v29 = vpop.f32.mrf.mxu1 }
 0x25a   : > { %v2338_v31 = vadd.f32 %v2224_v36, %v927_v29 }
 0x25b   : > { %v1707_v32 = vpop.f32.mrf.mxu1 }
 0x25c   : > { %1000 = vmax.xlane.f32.xlu0 %v2335_v30  ;;  %1002 = vmax.xlane.f32.xlu1 %v2338_v31  ;;  %v2351_v37 = vadd.f32 %v1707_v32, %v2224_v36 }
 0x25d   : > { %v937_v33 = vpop.f32.mrf.mxu1 }
 0x25e   : > { %v2346_v35 = vadd.f32 %v2224_v36, %v937_v33 }
 0x260   : > { %1004 = vmax.xlane.f32.xlu0 %v2343_v34  ;;  %1006 = vmax.xlane.f32.xlu1 %v2346_v35 }
 0x264   : > { %1008 = vmax.xlane.f32.xlu0 %v2351_v37 }
 0x2ab   : > { %v949_v39 = vpop.xlane.xlu1 %948 }
 0x2ac   : > { %v2355_v41 = vsub.f32 %v2227_v38, %v949_v39 }
 0x2ad   : > { %v947_v42 = vpop.xlane.xlu0 %946 }
 0x2ae   : > { %v1044_v44 = vmul.f32 1.442695, %v2355_v41  ;;  %v2359_v45 = vsub.f32 %v2230_v40, %v947_v42 }
 0x2b0   : > { %1753 = vpow2.f32 %v1044_v44  ;;  %v1042_v48 = vmul.f32 1.442695, %v2359_v45 }
 0x2b1   : > { %v953_v49 = vpop.xlane.xlu0 %952 }
 0x2b2   : > { %1755 = vpow2.f32 %v1042_v48  ;;  %v2363_v36 = vsub.f32 %v2235_v43, %v953_v49 }
 0x2b4   : > { %v1048_v52 = vmul.f32 1.442695, %v2363_v36 }
 0x2b5   : > { %v955_v53 = vpop.xlane.xlu1 %954  ;;  %v951_v56 = vpop.xlane.xlu0 %950 }
 0x2b6   : > { %1757 = vpow2.f32 %v1048_v52  ;;  %v2367_v38 = vsub.f32 %v2242_v47, %v955_v53  ;;  %v2370_v57 = vsub.f32 %v2239_v46, %v951_v56 }
 0x2b8   : > { %v1046_v40 = vmul.f32 1.442695, %v2370_v57  ;;  %v1050_v0 = vmul.f32 1.442695, %v2367_v38 }
 0x2b9   : > { %v959_v60 = vpop.xlane.xlu1 %958  ;;  %v957_v61 = vpop.xlane.xlu0 %956 }
 0x2ba   : > { %v2375_v43 = vsub.f32 %v2250_v51, %v959_v60  ;;  %v2378_v1 = vsub.f32 %v2247_v50, %v957_v61  ;;  %1759 = vpow2.f32 %v1046_v40 }
 0x2bb   : > { %1761 = vpow2.f32 %v1050_v0 }
 0x2bc   : > { %v1052_v4 = vmul.f32 1.442695, %v2378_v1  ;;  %v1054_v46 = vmul.f32 1.442695, %v2375_v43 }
 0x2bd   : > { %v1754_v47 = vpop.eup %1753  ;;  %v963_v5 = vpop.xlane.xlu1 %962 }
 0x2be   : > { %v961_v8 = vpop.xlane.xlu0 %960  ;;  %v2383_v9 = vsub.f32 %v2258_v55, %v963_v5  ;;  %1108 = vadd.xlane.f32.xlu0 %v1754_v47  ;;  %1763 = vpow2.f32 %v1052_v4 }
 0x2bf   : > { %v2386_v12 = vsub.f32 %v2255_v54, %v961_v8  ;;  %v1756_v51 = vpop.eup %1755  ;;  %1765 = vpow2.f32 %v1054_v46 }
 0x2c0   : > { %1106 = vadd.xlane.f32.xlu1 %v1756_v51  ;;  %v1058_v17 = vmul.f32 1.442695, %v2383_v9 }
 0x2c1   : > { %v1056_v50 = vmul.f32 1.442695, %v2386_v12  ;;  %v967_v13 = vpop.xlane.xlu1 %966 }
 0x2c2   : > { %v965_v16 = vpop.xlane.xlu0 %964  ;;  %v2391_v20 = vsub.f32 %v2266_v59, %v967_v13 }
 0x2c3   : > { %v2394_v55 = vsub.f32 %v2263_v58, %v965_v16  ;;  %v1758_v21 = vpop.eup %1757  ;;  %1767 = vpow2.f32 %v1056_v50 }
 0x2c4   : > { %1112 = vadd.xlane.f32.xlu0 %v1758_v21  ;;  %1769 = vpow2.f32 %v1058_v17  ;;  %v1062_v28 = vmul.f32 1.442695, %v2391_v20 }
 0x2c5   : > { %v1060_v54 = vmul.f32 1.442695, %v2394_v55  ;;  %v971_v24 = vpop.xlane.xlu1 %970 }
 0x2c6   : > { %v969_v25 = vpop.xlane.xlu0 %968  ;;  %v2399_v29 = vsub.f32 %v2274_v63, %v971_v24 }
 0x2c7   : > { %v2402_v32 = vsub.f32 %v2271_v62, %v969_v25  ;;  %1771 = vpow2.f32 %v1060_v54  ;;  %v1760_v59 = vpop.eup %1759 }
 0x2c8   : > { %1110 = vadd.xlane.f32.xlu1 %v1760_v59  ;;  %1773 = vpow2.f32 %v1062_v28  ;;  %v1066_v42 = vmul.f32 1.442695, %v2399_v29  ;;  %v1762_v63 = vpop.eup %1761 }
 0x2c9   : > { %v1064_v58 = vmul.f32 1.442695, %v2402_v32  ;;  %v975_v33 = vpop.xlane.xlu1 %974 }
 0x2ca   : > { %v973_v39 = vpop.xlane.xlu0 %972  ;;  %v2407_v44 = vsub.f32 %v2282_v3, %v975_v33 }
 0x2cb   : > { %v2410_v48 = vsub.f32 %v2279_v2, %v973_v39  ;;  %1775 = vpow2.f32 %v1064_v58  ;;  %v1764_v62 = vpop.eup %1763 }
 0x2cc   : > { %1114 = vadd.xlane.f32.xlu1 %v1762_v63  ;;  %1116 = vadd.xlane.f32.xlu0 %v1764_v62  ;;  %1777 = vpow2.f32 %v1066_v42  ;;  %v1070_v56 = vmul.f32 1.442695, %v2407_v44  ;;  %v1766_v2 = vpop.eup %1765 }
 0x2cd   : > { %v1068_v49 = vmul.f32 1.442695, %v2410_v48  ;;  %v979_v52 = vpop.xlane.xlu1 %978 }
 0x2ce   : > { %v977_v53 = vpop.xlane.xlu0 %976  ;;  %v2415_v40 = vsub.f32 %v2290_v7, %v979_v52 }
 0x2cf   : > { %v2418_v3 = vsub.f32 %v2287_v6, %v977_v53  ;;  %1779 = vpow2.f32 %v1068_v49 }
 0x2d0   : > { %v1768_v60 = vpop.eup %1767  ;;  %1118 = vadd.xlane.f32.xlu1 %v1766_v2  ;;  %1781 = vpow2.f32 %v1070_v56  ;;  %v1074_v47 = vmul.f32 1.442695, %v2415_v40 }
 0x2d1   : > { %v1072_v61 = vmul.f32 1.442695, %v2418_v3  ;;  %1120 = vadd.xlane.f32.xlu0 %v1768_v60  ;;  %v983_v0 = vpop.xlane.xlu1 %982  ;;  %v1770_v6 = vpop.eup %1769 }
 0x2d2   : > { %v981_v4 = vpop.xlane.xlu0 %980  ;;  %v2423_v5 = vsub.f32 %v2298_v11, %v983_v0 }
 0x2d3   : > { %v2426_v7 = vsub.f32 %v2295_v10, %v981_v4  ;;  %1783 = vpow2.f32 %v1072_v61 }
 0x2d4   : > { %v1772_v8 = vpop.eup %1771  ;;  %1122 = vadd.xlane.f32.xlu1 %v1770_v6  ;;  %1785 = vpow2.f32 %v1074_v47  ;;  %v1078_v13 = vmul.f32 1.442695, %v2423_v5 }
 0x2d5   : > { %v1076_v46 = vmul.f32 1.442695, %v2426_v7  ;;  %1124 = vadd.xlane.f32.xlu0 %v1772_v8  ;;  %v987_v51 = vpop.xlane.xlu1 %986  ;;  %v1774_v10 = vpop.eup %1773 }
 0x2d6   : > { %v985_v50 = vpop.xlane.xlu0 %984  ;;  %v2431_v16 = vsub.f32 %v2306_v15, %v987_v51 }
 0x2d7   : > { %v2434_v11 = vsub.f32 %v2303_v14, %v985_v50  ;;  %1787 = vpow2.f32 %v1076_v46 }
 0x2d8   : > { %v1776_v17 = vpop.eup %1775  ;;  %1126 = vadd.xlane.f32.xlu1 %v1774_v10  ;;  %1789 = vpow2.f32 %v1078_v13  ;;  %v1082_v25 = vmul.f32 1.442695, %v2431_v16 }
 0x2d9   : > { %v1080_v21 = vmul.f32 1.442695, %v2434_v11  ;;  %1128 = vadd.xlane.f32.xlu0 %v1776_v17  ;;  %v991_v54 = vpop.xlane.xlu1 %990  ;;  %v1778_v14 = vpop.eup %1777 }
 0x2da   : > { %v989_v24 = vpop.xlane.xlu0 %988  ;;  %v2439_v28 = vsub.f32 %v2314_v19, %v991_v54 }
 0x2db   : > { %v2442_v15 = vsub.f32 %v2311_v18, %v989_v24  ;;  %1791 = vpow2.f32 %v1080_v21 }
 0x2dc   : > { %v1780_v59 = vpop.eup %1779  ;;  %1130 = vadd.xlane.f32.xlu1 %v1778_v14  ;;  %1793 = vpow2.f32 %v1082_v25  ;;  %v1086_v42 = vmul.f32 1.442695, %v2439_v28 }
 0x2dd   : > { %v1084_v58 = vmul.f32 1.442695, %v2442_v15  ;;  %1132 = vadd.xlane.f32.xlu0 %v1780_v59  ;;  %v995_v33 = vpop.xlane.xlu1 %994  ;;  %v1782_v18 = vpop.eup %1781 }
 0x2de   : > { %v993_v39 = vpop.xlane.xlu0 %992  ;;  %v2447_v63 = vsub.f32 %v2322_v23, %v995_v33 }
 0x2df   : > { %v2450_v19 = vsub.f32 %v2319_v22, %v993_v39  ;;  %1795 = vpow2.f32 %v1084_v58 }
 0x2e0   : > { %v1784_v62 = vpop.eup %1783  ;;  %1134 = vadd.xlane.f32.xlu1 %v1782_v18  ;;  %1797 = vpow2.f32 %v1086_v42  ;;  %v1090_v56 = vmul.f32 1.442695, %v2447_v63 }
 0x2e1   : > { %v1088_v49 = vmul.f32 1.442695, %v2450_v19  ;;  %1136 = vadd.xlane.f32.xlu0 %v1784_v62  ;;  %v999_v52 = vpop.xlane.xlu1 %998  ;;  %v1786_v22 = vpop.eup %1785 }
 0x2e2   : > { %v997_v53 = vpop.xlane.xlu0 %996  ;;  %v2455_v2 = vsub.f32 %v2330_v27, %v999_v52 }
 0x2e3   : > { %v2458_v23 = vsub.f32 %v2327_v26, %v997_v53  ;;  %1799 = vpow2.f32 %v1088_v49 }
 0x2e4   : > { %v1788_v60 = vpop.eup %1787  ;;  %1138 = vadd.xlane.f32.xlu1 %v1786_v22  ;;  %1801 = vpow2.f32 %v1090_v56  ;;  %v1094_v47 = vmul.f32 1.442695, %v2455_v2 }
 0x2e5   : > { %v1092_v61 = vmul.f32 1.442695, %v2458_v23  ;;  %1140 = vadd.xlane.f32.xlu0 %v1788_v60  ;;  %v1003_v0 = vpop.xlane.xlu1 %1002  ;;  %v1790_v26 = vpop.eup %1789 }
 0x2e6   : > { %v1001_v4 = vpop.xlane.xlu0 %1000  ;;  %v2463_v6 = vsub.f32 %v2338_v31, %v1003_v0 }
 0x2e7   : > { %v2466_v27 = vsub.f32 %v2335_v30, %v1001_v4  ;;  %1803 = vpow2.f32 %v1092_v61 }
 0x2e8   : > { %v1792_v8 = vpop.eup %1791  ;;  %1142 = vadd.xlane.f32.xlu1 %v1790_v26  ;;  %1805 = vpow2.f32 %v1094_v47  ;;  %v1098_v13 = vmul.f32 1.442695, %v2463_v6 }
 0x2e9   : > { %v1096_v46 = vmul.f32 1.442695, %v2466_v27  ;;  %1144 = vadd.xlane.f32.xlu0 %v1792_v8  ;;  %v1007_v51 = vpop.xlane.xlu1 %1006  ;;  %v1794_v31 = vpop.eup %1793 }
 0x2ea   : > { %v1005_v50 = vpop.xlane.xlu0 %1004  ;;  %v2474_v30 = vsub.f32 %v2346_v35, %v1007_v51 }
 0x2eb   : > { %v2471_v10 = vsub.f32 %v2343_v34, %v1005_v50  ;;  %1807 = vpow2.f32 %v1096_v46 }
 0x2ec   : > { %v1796_v17 = vpop.eup %1795  ;;  %1146 = vadd.xlane.f32.xlu1 %v1794_v31  ;;  %1809 = vpow2.f32 %v1098_v13  ;;  %v1102_v14 = vmul.f32 1.442695, %v2474_v30 }
 0x2ed   : > { %v1100_v21 = vmul.f32 1.442695, %v2471_v10  ;;  %1148 = vadd.xlane.f32.xlu0 %v1796_v17  ;;  %v1798_v25 = vpop.eup %1797 }
 0x2ee   : > { %v1009_v54 = vpop.xlane.xlu0 %1008 }
 0x2ef   : > { %v2478_v24 = vsub.f32 %v2351_v37, %v1009_v54  ;;  %1811 = vpow2.f32 %v1100_v21 }
 0x2f0   : > { %v1800_v34 = vpop.eup %1799  ;;  %1150 = vadd.xlane.f32.xlu1 %v1798_v25 }
 0x2f1   : > { %v1104_v59 = vmul.f32 1.442695, %v2478_v24  ;;  %1152 = vadd.xlane.f32.xlu0 %v1800_v34  ;;  %v1802_v35 = vpop.eup %1801 }
 0x2f3   : > { %1813 = vpow2.f32 %v1104_v59 }
 0x2f4   : > { %1815 = vpow2.f32 %v1102_v14  ;;  %v1804_v58 = vpop.eup %1803  ;;  %1154 = vadd.xlane.f32.xlu1 %v1802_v35 }
 0x2f5   : > { %1156 = vadd.xlane.f32.xlu0 %v1804_v58  ;;  %v1806_v33 = vpop.eup %1805 }
 0x2f8   : > { %v1808_v39 = vpop.eup %1807  ;;  %1158 = vadd.xlane.f32.xlu1 %v1806_v33 }
 0x2f9   : > { %1160 = vadd.xlane.f32.xlu0 %v1808_v39  ;;  %v1810_v37 = vpop.eup %1809 }
 0x2fc   : > { %v1812_v42 = vpop.eup %1811  ;;  %1162 = vadd.xlane.f32.xlu1 %v1810_v37 }
 0x2fd   : > { %1164 = vadd.xlane.f32.xlu0 %v1812_v42 }
 0x300   : > { %v1814_v18 = vpop.eup %1813 }
 0x301   : > { %v1816_v62 = vpop.eup %1815  ;;  %1168 = vadd.xlane.f32.xlu0 %v1814_v18 }
 0x302   : > { %1166 = vadd.xlane.f32.xlu1 %v1816_v62 }
 0x347   : > { %v1109_v49 = vpop.xlane.xlu0 %1108 }
 0x348   : > { %1817 = vlog2.f32 %v1109_v49 }
 0x349   : > { %v1107_v52 = vpop.xlane.xlu1 %1106 }
 0x34a   : > { %1819 = vlog2.f32 %v1107_v52 }
 0x34d   : > { %v1113_v53 = vpop.xlane.xlu0 %1112 }
 0x34e   : > { %1821 = vlog2.f32 %v1113_v53 }
 0x351   : > { %v1111_v56 = vpop.xlane.xlu1 %1110 }
 0x352   : > { %1823 = vlog2.f32 %v1111_v56 }
 0x355   : > { %v1818_v22 = vpop.eup %1817  ;;  %v1115_v61 = vpop.xlane.xlu1 %1114 }
 0x356   : > { %v1173_v60 = vmul.f32 0.6931472, %v1818_v22  ;;  %v1117_v0 = vpop.xlane.xlu0 %1116  ;;  %1825 = vlog2.f32 %v1115_v61 }
 0x357   : > { %v1820_v4 = vpop.eup %1819  ;;  %1827 = vlog2.f32 %v1117_v0 }
 0x358   : > { %v1235_v47 = vsub.f32 %v2355_v41, %v1173_v60  ;;  %v1171_v26 = vmul.f32 0.6931472, %v1820_v4 }
 0x359   : > { %v1119_v46 = vpop.xlane.xlu1 %1118 }
 0x35a   : > { %1267 = vst [vmem:[%s2486_s7 + $0x8] sm:$0xff] %v1235_v47  ;;  %v1234_v8 = vsub.f32 %v2359_v45, %v1171_v26  ;;  %v1121_v51 = vpop.xlane.xlu0 %1120  ;;  %1829 = vlog2.f32 %v1119_v46 }
 0x35b   : > { %v1822_v50 = vpop.eup %1821  ;;  %1831 = vlog2.f32 %v1121_v51 }
 0x35c   : > { %1266 = vst [vmem:[%s2486_s7] sm:$0xff] %v1234_v8  ;;  %v1177_v13 = vmul.f32 0.6931472, %v1822_v50 }
 0x35d   : > { %v1123_v31 = vpop.xlane.xlu1 %1122 }
 0x35e   : > { %v1237_v41 = vsub.f32 %v2363_v36, %v1177_v13  ;;  %v1125_v17 = vpop.xlane.xlu0 %1124  ;;  %1833 = vlog2.f32 %v1123_v31 }
 0x35f   : > { %v1824_v21 = vpop.eup %1823  ;;  %1835 = vlog2.f32 %v1125_v17 }
 0x360   : > { %1269 = vst [vmem:[%s2486_s7 + $0x18] sm:$0xff] %v1237_v41  ;;  %v1175_v54 = vmul.f32 0.6931472, %v1824_v21 }
 0x361   : > { %v1127_v25 = vpop.xlane.xlu1 %1126 }
 0x362   : > { %v1129_v14 = vpop.xlane.xlu0 %1128  ;;  %v1236_v45 = vsub.f32 %v2370_v57, %v1175_v54  ;;  %1837 = vlog2.f32 %v1127_v25 }
 0x363   : > { %v1826_v34 = vpop.eup %1825  ;;  %1839 = vlog2.f32 %v1129_v14 }
 0x364   : > { %v1828_v59 = vpop.eup %1827  ;;  %1268 = vst [vmem:[%s2486_s7 + $0x10] sm:$0xff] %v1236_v45  ;;  %v1179_v35 = vmul.f32 0.6931472, %v1826_v34 }
 0x365   : > { %v1181_v36 = vmul.f32 0.6931472, %v1828_v59  ;;  %v1131_v58 = vpop.xlane.xlu1 %1130 }
 0x366   : > { %v1133_v33 = vpop.xlane.xlu0 %1132  ;;  %v1238_v39 = vsub.f32 %v2367_v38, %v1179_v35  ;;  %1841 = vlog2.f32 %v1131_v58 }
 0x367   : > { %v1830_v37 = vpop.eup %1829  ;;  %v1239_v42 = vsub.f32 %v2378_v1, %v1181_v36  ;;  %1843 = vlog2.f32 %v1133_v33 }
 0x368   : > { %v1832_v57 = vpop.eup %1831  ;;  %1270 = vst [vmem:[%s2486_s7 + $0x20] sm:$0xff] %v1238_v39  ;;  %v1183_v18 = vmul.f32 0.6931472, %v1830_v37 }
 0x369   : > { %1271 = vst [vmem:[%s2486_s7 + $0x28] sm:$0xff] %v1239_v42  ;;  %v1185_v62 = vmul.f32 0.6931472, %v1832_v57  ;;  %v1135_v49 = vpop.xlane.xlu1 %1134 }
 0x36a   : > { %v1137_v52 = vpop.xlane.xlu0 %1136  ;;  %v1240_v53 = vsub.f32 %v2375_v43, %v1183_v18  ;;  %1845 = vlog2.f32 %v1135_v49 }
 0x36b   : > { %v1834_v56 = vpop.eup %1833  ;;  %v1241_v38 = vsub.f32 %v2386_v12, %v1185_v62  ;;  %1847 = vlog2.f32 %v1137_v52 }
 0x36c   : > { %v1836_v22 = vpop.eup %1835  ;;  %1272 = vst [vmem:[%s2486_s7 + $0x30] sm:$0xff] %v1240_v53  ;;  %v1187_v1 = vmul.f32 0.6931472, %v1834_v56 }
 0x36d   : > { %1273 = vst [vmem:[%s2486_s7 + $0x38] sm:$0xff] %v1241_v38  ;;  %v1189_v60 = vmul.f32 0.6931472, %v1836_v22  ;;  %v1139_v61 = vpop.xlane.xlu1 %1138 }
 0x36e   : > { %v1141_v0 = vpop.xlane.xlu0 %1140  ;;  %v1242_v4 = vsub.f32 %v2383_v9, %v1187_v1  ;;  %1849 = vlog2.f32 %v1139_v61 }
 0x36f   : > { %v1838_v47 = vpop.eup %1837  ;;  %v1243_v43 = vsub.f32 %v2394_v55, %v1189_v60  ;;  %1851 = vlog2.f32 %v1141_v0 }
 0x370   : > { %v1840_v26 = vpop.eup %1839  ;;  %1274 = vst [vmem:[%s2486_s7 + $0x40] sm:$0xff] %v1242_v4  ;;  %v1191_v12 = vmul.f32 0.6931472, %v1838_v47 }
 0x371   : > { %1275 = vst [vmem:[%s2486_s7 + $0x48] sm:$0xff] %v1243_v43  ;;  %v1193_v8 = vmul.f32 0.6931472, %v1840_v26  ;;  %v1143_v46 = vpop.xlane.xlu1 %1142 }
 0x372   : > { %v1145_v51 = vpop.xlane.xlu0 %1144  ;;  %v1244_v50 = vsub.f32 %v2391_v20, %v1191_v12  ;;  %1853 = vlog2.f32 %v1143_v46 }
 0x373   : > { %v1842_v13 = vpop.eup %1841  ;;  %v1245_v9 = vsub.f32 %v2402_v32, %v1193_v8  ;;  %1855 = vlog2.f32 %v1145_v51 }
 0x374   : > { %v1844_v41 = vpop.eup %1843  ;;  %1276 = vst [vmem:[%s2486_s7 + $0x50] sm:$0xff] %v1244_v50  ;;  %v1195_v55 = vmul.f32 0.6931472, %v1842_v13 }
 0x375   : > { %1277 = vst [vmem:[%s2486_s7 + $0x58] sm:$0xff] %v1245_v9  ;;  %v1197_v31 = vmul.f32 0.6931472, %v1844_v41  ;;  %v1147_v17 = vpop.xlane.xlu1 %1146 }
 0x376   : > { %v1149_v21 = vpop.xlane.xlu0 %1148  ;;  %v1246_v54 = vsub.f32 %v2399_v29, %v1195_v55  ;;  %1857 = vlog2.f32 %v1147_v17 }
 0x377   : > { %v1846_v25 = vpop.eup %1845  ;;  %v1247_v20 = vsub.f32 %v2410_v48, %v1197_v31  ;;  %1859 = vlog2.f32 %v1149_v21 }
 0x378   : > { %v1848_v14 = vpop.eup %1847  ;;  %1278 = vst [vmem:[%s2486_s7 + $0x60] sm:$0xff] %v1246_v54  ;;  %v1199_v32 = vmul.f32 0.6931472, %v1846_v25 }
 0x379   : > { %1279 = vst [vmem:[%s2486_s7 + $0x68] sm:$0xff] %v1247_v20  ;;  %v1201_v45 = vmul.f32 0.6931472, %v1848_v14  ;;  %v1151_v34 = vpop.xlane.xlu1 %1150 }
 0x37a   : > { %v1153_v59 = vpop.xlane.xlu0 %1152  ;;  %v1248_v35 = vsub.f32 %v2407_v44, %v1199_v32  ;;  %1861 = vlog2.f32 %v1151_v34 }
 0x37b   : > { %v1850_v36 = vpop.eup %1849  ;;  %v1249_v29 = vsub.f32 %v2418_v3, %v1201_v45  ;;  %1863 = vlog2.f32 %v1153_v59 }
 0x37c   : > { %v1852_v58 = vpop.eup %1851  ;;  %1280 = vst [vmem:[%s2486_s7 + $0x70] sm:$0xff] %v1248_v35  ;;  %v1203_v48 = vmul.f32 0.6931472, %v1850_v36 }
 0x37d   : > { %1281 = vst [vmem:[%s2486_s7 + $0x78] sm:$0xff] %v1249_v29  ;;  %v1205_v33 = vmul.f32 0.6931472, %v1852_v58  ;;  %v1155_v39 = vpop.xlane.xlu1 %1154 }
 0x37e   : > { %v1157_v37 = vpop.xlane.xlu0 %1156  ;;  %v1250_v42 = vsub.f32 %v2415_v40, %v1203_v48  ;;  %1865 = vlog2.f32 %v1155_v39 }
 0x37f   : > { %v1854_v57 = vpop.eup %1853  ;;  %v1251_v44 = vsub.f32 %v2426_v7, %v1205_v33  ;;  %1867 = vlog2.f32 %v1157_v37 }
 0x380   : > { %v1856_v18 = vpop.eup %1855  ;;  %1282 = vst [vmem:[%s2486_s7 + $0x80] sm:$0xff] %v1250_v42  ;;  %v1207_v3 = vmul.f32 0.6931472, %v1854_v57 }
 0x381   : > { %1283 = vst [vmem:[%s2486_s7 + $0x88] sm:$0xff] %v1251_v44  ;;  %v1209_v62 = vmul.f32 0.6931472, %v1856_v18  ;;  %v1159_v49 = vpop.xlane.xlu1 %1158 }
 0x382   : > { %v1161_v52 = vpop.xlane.xlu0 %1160  ;;  %v1252_v53 = vsub.f32 %v2423_v5, %v1207_v3  ;;  %1869 = vlog2.f32 %v1159_v49 }
 0x383   : > { %v1858_v56 = vpop.eup %1857  ;;  %v1253_v40 = vsub.f32 %v2434_v11, %v1209_v62  ;;  %1871 = vlog2.f32 %v1161_v52 }
 0x384   : > { %v1860_v38 = vpop.eup %1859  ;;  %1284 = vst [vmem:[%s2486_s7 + $0x90] sm:$0xff] %v1252_v53  ;;  %v1211_v7 = vmul.f32 0.6931472, %v1858_v56 }
 0x385   : > { %1285 = vst [vmem:[%s2486_s7 + $0x98] sm:$0xff] %v1253_v40  ;;  %v1213_v22 = vmul.f32 0.6931472, %v1860_v38  ;;  %v1163_v1 = vpop.xlane.xlu1 %1162 }
 0x386   : > { %v1165_v60 = vpop.xlane.xlu0 %1164  ;;  %v1254_v61 = vsub.f32 %v2431_v16, %v1211_v7  ;;  %1873 = vlog2.f32 %v1163_v1 }
 0x387   : > { %v1862_v0 = vpop.eup %1861  ;;  %v1255_v5 = vsub.f32 %v2442_v15, %v1213_v22  ;;  %1875 = vlog2.f32 %v1165_v60 }
 0x388   : > { %v1864_v4 = vpop.eup %1863  ;;  %1286 = vst [vmem:[%s2486_s7 + $0xa0] sm:$0xff] %v1254_v61  ;;  %v1215_v11 = vmul.f32 0.6931472, %v1862_v0 }
 0x389   : > { %1287 = vst [vmem:[%s2486_s7 + $0xa8] sm:$0xff] %v1255_v5  ;;  %v1217_v47 = vmul.f32 0.6931472, %v1864_v4 }
 0x38a   : > { %v1169_v26 = vpop.xlane.xlu0 %1168  ;;  %v1256_v12 = vsub.f32 %v2439_v28, %v1215_v11 }
 0x38b   : > { %v1167_v43 = vpop.xlane.xlu1 %1166  ;;  %v1866_v16 = vpop.eup %1865  ;;  %v1257_v8 = vsub.f32 %v2450_v19, %v1217_v47 }
 0x38c   : > { %1877 = vlog2.f32 %v1167_v43  ;;  %v1868_v46 = vpop.eup %1867  ;;  %1288 = vst [vmem:[%s2486_s7 + $0xb0] sm:$0xff] %v1256_v12  ;;  %v1219_v15 = vmul.f32 0.6931472, %v1866_v16 }
 0x38d   : > { %1879 = vlog2.f32 %v1169_v26  ;;  %1289 = vst [vmem:[%s2486_s7 + $0xb8] sm:$0xff] %v1257_v8  ;;  %v1221_v51 = vmul.f32 0.6931472, %v1868_v46 }
 0x38e   : > { %v1258_v50 = vsub.f32 %v2447_v63, %v1219_v15 }
 0x38f   : > { %v1870_v13 = vpop.eup %1869  ;;  %v1259_v9 = vsub.f32 %v2458_v23, %v1221_v51 }
 0x390   : > { %v1872_v41 = vpop.eup %1871  ;;  %1290 = vst [vmem:[%s2486_s7 + $0xc0] sm:$0xff] %v1258_v50  ;;  %v1223_v28 = vmul.f32 0.6931472, %v1870_v13 }
 0x391   : > { %1291 = vst [vmem:[%s2486_s7 + $0xc8] sm:$0xff] %v1259_v9  ;;  %v1225_v19 = vmul.f32 0.6931472, %v1872_v41 }
 0x392   : > { %v1260_v55 = vsub.f32 %v2455_v2, %v1223_v28 }
 0x393   : > { %v1874_v31 = vpop.eup %1873  ;;  %v1261_v17 = vsub.f32 %v2466_v27, %v1225_v19 }
 0x394   : > { %v1876_v21 = vpop.eup %1875  ;;  %1292 = vst [vmem:[%s2486_s7 + $0xd0] sm:$0xff] %v1260_v55  ;;  %v1227_v63 = vmul.f32 0.6931472, %v1874_v31 }
 0x395   : > { %1293 = vst [vmem:[%s2486_s7 + $0xd8] sm:$0xff] %v1261_v17  ;;  %v1229_v23 = vmul.f32 0.6931472, %v1876_v21 }
 0x396   : > { %v1262_v54 = vsub.f32 %v2463_v6, %v1227_v63 }
 0x397   : > { %v1263_v20 = vsub.f32 %v2471_v10, %v1229_v23 }
 0x398   : > { %1294 = vst [vmem:[%s2486_s7 + $0xe0] sm:$0xff] %v1262_v54 }
 0x399   : > { %v1878_v25 = vpop.eup %1877  ;;  %1295 = vst [vmem:[%s2486_s7 + $0xe8] sm:$0xff] %v1263_v20 }
 0x39a   : > { %v1880_v2 = vpop.eup %1879  ;;  %v1231_v14 = vmul.f32 0.6931472, %v1878_v25 }
 0x39b   : > { %v1233_v27 = vmul.f32 0.6931472, %v1880_v2 }
 0x39c   : > { %v1264_v32 = vsub.f32 %v2474_v30, %v1231_v14 }
 0x39d   : > { %v1265_v6 = vsub.f32 %v2478_v24, %v1233_v27 }
 0x39e   : > { %1296 = vst [vmem:[%s2486_s7 + $0xf0] sm:$0xff] %v1264_v32 }
 0x39f   : > { %1297 = vst [vmem:[%s2486_s7 + $0xf8] sm:$0xff] %v1265_v6 }
 0x3a0   : > { %1894 = shalt.err (!%p1891_p3)
}
 0x3a1   : > { %s1895_s23 = scalar_lea.hbm %s2553_s11, 4096  ;;  %s1899_s29 = scalar_lea.hbm %s2606_s4, 8192 }
 0x3a2   : > { %p1896_p4 = scmp.ne.s32.totalorder %s2553_s11, %s1895_s23  ;;  %p1900_p9 = scmp.lt.s32.totalorder %s2553_s11, %s2606_s4 }
 0x3a3   : > { %p1901_p10 = scmp.lt.s32.totalorder %s1899_s29, %s1895_s23 }
 0x3a4   : > { %p1897_p7 = pnand %p1896_p4, %p2011_p5 }
 0x3a5   : > { %p1902_p11 = por %p1901_p10, %p1900_p9 }
 0x3a6   : > { %p1898_p8 = pneg %p1897_p7 }
 0x3a8   : > { %p1903_p12 = pnand %p1902_p11, %p1898_p8 }
 0x3aa   : > { %1906 = shalt.err (!%p1903_p12)
}
 0x3ab   : > { %s1946_s6 = smov 128   ;;  %s1947_s7 = smov 8  }
 0x3ac   : > { %1708 = dma.vmem_to_hbm [thread:$0]  (%p2011_p5), %s2555_s9, 4096, %s2553_s11, %s2562_s19, %s1946_s6, %s1946_s6, %s1947_s7  }
 0x3ad PF: > { %p1714_p13 = scmp.ge.s32.totalorder %s1941_s18, 2  ;;  %s1327_s8 = sand.u32 1, %s1929_s15  }
 0x3ae   : > { %s1328_s10 = scalar_lea.sflag [#allocation3], %s1327_s8 }
 0x3af   : > { %p1711_p0 = pnand %p1714_p13, %p2015_p6 }
 0x3b1   : > { %p1712_p1 = pneg %p1711_p0 }
 0x3b3   : > { %1924 = dma.done.wait (%p1712_p1), %s1328_s10, 4096  }
 0x3b4   : > { %1926 = vsyncadd (%p1712_p1), %s1328_s10, 4294963200  ;;  %p14_p2 = scmp.ge.s32.totalorder %s1998_s21, 4   ;;  %s2609_s15 = smov %s1933_s16 }
 0x3b5   : > { %s2610_s16 = smov %s1937_s17  ;;  %s2611_s17 = smov %s2009_s24 }
 0x3b6   : > { %s2612_s18 = smov %s1998_s21  ;;  %16 = sbr.rel (!%p14_p2) target bundleno = 3 (0x3), region = 71 }
 0x3bb   :  { %1333 = vsyncpa [#allocation3], 1 }
 0x3bc   :  { %1335 = vsyncpa [#allocation3 + $0x1], 1 }

</bundles_post_ra>
